<compile_context>
chip_gen: v5e
topology: v5e:2x2
jax: 0.10.0
libtpu: 0.0.40
codegen_flags: <defaults>
</compile_context>

<pallas_src>
import functools

import jax
import jax.numpy as jnp
from jax.experimental import pallas as pl
from jax.experimental.pallas import tpu as pltpu


def _round_up(x: int, m: int) -> int:
    return ((x + m - 1) // m) * m


def _choose_batch_tile(B: int, tile_b: int) -> int:
    """Pick a sublane-aligned batch tile; prefer >=2 grid steps for v7x megacore."""
    b8 = _round_up(B, 8)
    if b8 <= 8:
        return 8
    if b8 <= tile_b:
        # Whole batch would fit in one tile; split in two so the parallel batch axis
        # can shard across v7x's two TensorCores (no-op on single-TC v5e/v6e).
        return _round_up((b8 + 1) // 2, 8)
    return tile_b


def _mlp_kernel(x_ref, w1_ref, b1_ref, w2_ref, b2_ref, o_ref):
    # Hidden layer: h = sigmoid(x @ W1 + b1)   (f32 accumulate on MXU)
    h = jnp.dot(x_ref[...], w1_ref[...], preferred_element_type=jnp.float32)
    h = h + b1_ref[...]                       # (TB, Hp) + (1, Hp) broadcast
    # sigmoid via a single EUP transcendental (tanh); exact to f32 rounding.
    h = 0.5 * jnp.tanh(0.5 * h) + 0.5
    # Output layer: y = h @ W2 + b2
    y = jnp.dot(h, w2_ref[...], preferred_element_type=jnp.float32)
    y = y + b2_ref[...]
    o_ref[...] = y.astype(o_ref.dtype)


def prepare_params(w1_t, b1, w2_t, b2):
    """One-time padding of weights/biases (hidden dim -> multiple of 128).

    w1_t: (in, hidden)  b1: (hidden,)  w2_t: (hidden, out)  b2: (out,)
    Padded hidden units see zero rows of W2 -> contribute nothing -> exact result.
    """
    hid = w1_t.shape[1]
    hid_p = _round_up(hid, 128)
    w1_p = jnp.pad(w1_t, ((0, 0), (0, hid_p - hid)))
    b1_p = jnp.pad(b1.reshape(1, -1), ((0, 0), (0, hid_p - hid)))
    w2_p = jnp.pad(w2_t, ((0, hid_p - hid), (0, 0)))
    b2_p = b2.reshape(1, -1)
    return w1_p, b1_p, w2_p, b2_p


@functools.partial(jax.jit, static_argnames=("tile_b",))
def ml_model_forward(x, w1_p, b1_p, w2_p, b2_p, *, tile_b: int = 512):
    """Forward pass of MLModel on pre-padded params (see prepare_params).

    x:    (B, in)                       -- unpadded
    w1_p: (in, hid_p)   b1_p: (1, hid_p)
    w2_p: (hid_p, out)  b2_p: (1, out)
    Returns (B, out) in x.dtype.
    """
    B, in_size = x.shape
    hid_p = w1_p.shape[1]
    out_size = w2_p.shape[1]

    tb = _choose_batch_tile(B, tile_b)
    B_p = _round_up(B, tb)
    x_p = x if B_p == B else jnp.pad(x, ((0, B_p - B), (0, 0)))

    grid = (B_p // tb,)

    # Honest (unpadded-activation) cost: weights are padded, activations are not.
    flops = 2 * B_p * (in_size * hid_p + hid_p * out_size)
    transcendentals = B_p * hid_p
    bytes_accessed = 4 * (
        B_p * in_size + in_size * hid_p + hid_p + hid_p * out_size + out_size
        + B_p * out_size
    )

    out = pl.pallas_call(
        _mlp_kernel,
        out_shape=jax.ShapeDtypeStruct((B_p, out_size), x.dtype),
        grid_spec=pltpu.PrefetchScalarGridSpec(
            num_scalar_prefetch=0,
            grid=grid,
            in_specs=[
                # x: true last dim (== full array dim, so (8,128) rule is satisfied).
                pl.BlockSpec((tb, in_size), lambda i: (i, 0)),
                pl.BlockSpec((in_size, hid_p), lambda i: (0, 0)),   # W1: VMEM-resident
                pl.BlockSpec((1, hid_p), lambda i: (0, 0)),         # b1: VMEM-resident
                pl.BlockSpec((hid_p, out_size), lambda i: (0, 0)),  # W2: VMEM-resident
                pl.BlockSpec((1, out_size), lambda i: (0, 0)),      # b2: VMEM-resident
            ],
            # Output kept at its true width: fewer HBM bytes beats lane-dense stores here.
            out_specs=pl.BlockSpec((tb, out_size), lambda i: (i, 0)),
        ),
        compiler_params=pltpu.CompilerParams(
            dimension_semantics=("parallel",),  # batch axis shards across TCs on v7x
        ),
        cost_estimate=pl.CostEstimate(
            flops=flops,
            transcendentals=transcendentals,
            bytes_accessed=bytes_accessed,
        ),
    )(x_p, w1_p, b1_p, w2_p, b2_p)

    return out if B_p == B else out[:B]


def init_params(key, input_size, output_size, dtype=jnp.float32):
    """Deterministic init matching PyTorch nn.Linear default (uniform +-1/sqrt(fan_in))."""
    hidden_size = int((input_size + 1) * 2 / 3)
    k1, k2, k3, k4 = jax.random.split(key, 4)
    bound1 = 1.0 / jnp.sqrt(input_size)
    bound2 = 1.0 / jnp.sqrt(hidden_size)
    # Stored already transposed: (in_features, out_features)
    w1_t = jax.random.uniform(k1, (input_size, hidden_size), dtype, -bound1, bound1)
    b1 = jax.random.uniform(k2, (hidden_size,), dtype, -bound1, bound1)
    w2_t = jax.random.uniform(k3, (hidden_size, output_size), dtype, -bound2, bound2)
    b2 = jax.random.uniform(k4, (output_size,), dtype, -bound2, bound2)
    return w1_t, b1, w2_t, b2


if __name__ == "__main__":
    key = jax.random.PRNGKey(0)
    input_size, output_size, batch = 16, 4, 8

    kx, kp = jax.random.split(key)
    x = jax.random.normal(kx, (batch, input_size), jnp.float32)
    w1_t, b1, w2_t, b2 = init_params(kp, input_size, output_size)

    # One-time weight/bias padding, hoisted out of the per-call forward.
    w1_p, b1_p, w2_p, b2_p = prepare_params(w1_t, b1, w2_t, b2)
    w1_p, b1_p, w2_p, b2_p = jax.block_until_ready((w1_p, b1_p, w2_p, b2_p))

    out = jax.block_until_ready(ml_model_forward(x, w1_p, b1_p, w2_p, b2_p))

    # Pure-JAX reference (exact sigmoid, f32 end-to-end).
    ref = (1.0 / (1.0 + jnp.exp(-(x @ w1_t + b1)))) @ w2_t + b2
    assert out.shape == (batch, output_size)
    assert jnp.allclose(out, ref, atol=1e-5, rtol=1e-5), float(jnp.max(jnp.abs(out - ref)))

    # Larger batch: exercises batch padding and a multi-step ("parallel") grid.
    B2 = 1000
    x2 = jax.random.normal(jax.random.PRNGKey(1), (B2, input_size), jnp.float32)
    out2 = jax.block_until_ready(ml_model_forward(x2, w1_p, b1_p, w2_p, b2_p))
    ref2 = (1.0 / (1.0 + jnp.exp(-(x2 @ w1_t + b1)))) @ w2_t + b2
    assert out2.shape == (B2, output_size)
    assert jnp.allclose(out2, ref2, atol=1e-5, rtol=1e-5)

    print("KERNEL_OK")
</pallas_src>

<mosaic_0001>
module attributes {stable_mosaic.version = 11 : i64} {
  func.func @_mlp_kernel(%arg0: i32, %arg1: memref<8x16xf32, #tpu.memory_space<vmem>>, %arg2: memref<16x128xf32, #tpu.memory_space<vmem>>, %arg3: memref<1x128xf32, #tpu.memory_space<vmem>>, %arg4: memref<128x4xf32, #tpu.memory_space<vmem>>, %arg5: memref<1x4xf32, #tpu.memory_space<vmem>>, %arg6: memref<8x4xf32, #tpu.memory_space<vmem>>) attributes {dimension_semantics = [#tpu.dimension_semantics<parallel>], iteration_bounds = array<i64: 1>, scalar_prefetch = 0 : i64, scratch_operands = 0 : i64, tpu.core_type = #tpu.core_type<tc>, window_params = [{transform_indices = @transform_0, window_bounds = array<i64: 8, 16>}, {pipeline_mode = #tpu.pipeline_mode<synchronous>, transform_indices = @transform_1, window_bounds = array<i64: 16, 128>}, {pipeline_mode = #tpu.pipeline_mode<synchronous>, transform_indices = @transform_2, window_bounds = array<i64: 1, 128>}, {pipeline_mode = #tpu.pipeline_mode<synchronous>, transform_indices = @transform_3, window_bounds = array<i64: 128, 4>}, {pipeline_mode = #tpu.pipeline_mode<synchronous>, transform_indices = @transform_4, window_bounds = array<i64: 1, 4>}, {transform_indices = @transform_5, window_bounds = array<i64: 8, 4>}]} {
    %c0 = arith.constant 0 : index
    %c0_0 = arith.constant 0 : index
    %0 = vector.load %arg1[%c0, %c0_0] : memref<8x16xf32, #tpu.memory_space<vmem>>, vector<8x16xf32>
    %c0_1 = arith.constant 0 : index
    %c0_2 = arith.constant 0 : index
    %1 = vector.load %arg2[%c0_1, %c0_2] : memref<16x128xf32, #tpu.memory_space<vmem>>, vector<16x128xf32>
    %cst = arith.constant dense<0.000000e+00> : vector<8x128xf32>
    %2 = tpu.matmul %0, %1, %cst {dimension_numbers = #tpu.dot_dimension_numbers<[1], [0], [0], [1], [0, 0, 1, 1], [], []>} : vector<8x16xf32>, vector<16x128xf32>, vector<8x128xf32> -> vector<8x128xf32>
    %c0_3 = arith.constant 0 : index
    %c0_4 = arith.constant 0 : index
    %3 = vector.load %arg3[%c0_3, %c0_4] : memref<1x128xf32, #tpu.memory_space<vmem>>, vector<1x128xf32>
    %4 = vector.broadcast %3 : vector<1x128xf32> to vector<8x128xf32>
    %5 = arith.addf %2, %4 : vector<8x128xf32>
    %cst_5 = arith.constant 5.000000e-01 : f32
    %6 = vector.broadcast %cst_5 : f32 to vector<8x128xf32>
    %7 = arith.mulf %6, %5 : vector<8x128xf32>
    %8 = math.tanh %7 : vector<8x128xf32>
    %cst_6 = arith.constant 5.000000e-01 : f32
    %9 = vector.broadcast %cst_6 : f32 to vector<8x128xf32>
    %10 = arith.mulf %9, %8 : vector<8x128xf32>
    %cst_7 = arith.constant 5.000000e-01 : f32
    %11 = vector.broadcast %cst_7 : f32 to vector<8x128xf32>
    %12 = arith.addf %10, %11 : vector<8x128xf32>
    %c0_8 = arith.constant 0 : index
    %c0_9 = arith.constant 0 : index
    %13 = vector.load %arg4[%c0_8, %c0_9] : memref<128x4xf32, #tpu.memory_space<vmem>>, vector<128x4xf32>
    %cst_10 = arith.constant dense<0.000000e+00> : vector<8x4xf32>
    %14 = tpu.matmul %12, %13, %cst_10 {dimension_numbers = #tpu.dot_dimension_numbers<[1], [0], [0], [1], [0, 0, 1, 1], [], []>} : vector<8x128xf32>, vector<128x4xf32>, vector<8x4xf32> -> vector<8x4xf32>
    %c0_11 = arith.constant 0 : index
    %c0_12 = arith.constant 0 : index
    %15 = vector.load %arg5[%c0_11, %c0_12] : memref<1x4xf32, #tpu.memory_space<vmem>>, vector<1x4xf32>
    %16 = vector.broadcast %15 : vector<1x4xf32> to vector<8x4xf32>
    %17 = arith.addf %14, %16 : vector<8x4xf32>
    %c0_13 = arith.constant 0 : index
    %c0_14 = arith.constant 0 : index
    %18 = vector.load %arg6[%c0_13, %c0_14] : memref<8x4xf32, #tpu.memory_space<vmem>>, vector<8x4xf32>
    tpu.vector_store %arg6[%c0_13, %c0_14], %17 {strides = array<i32>} : memref<8x4xf32, #tpu.memory_space<vmem>>, vector<8x4xf32>,
    return
  }
  func.func @transform_0(%arg0: i32) -> (i32, i32) {
    %c0_i32 = arith.constant 0 : i32
    %c0_i32_0 = arith.constant 0 : i32
    return %arg0, %c0_i32 : i32, i32
  }
  func.func @transform_1(%arg0: i32) -> (i32, i32) {
    %c0_i32 = arith.constant 0 : i32
    %c0_i32_0 = arith.constant 0 : i32
    %c0_i32_1 = arith.constant 0 : i32
    return %c0_i32, %c0_i32_0 : i32, i32
  }
  func.func @transform_2(%arg0: i32) -> (i32, i32) {
    %c0_i32 = arith.constant 0 : i32
    %c0_i32_0 = arith.constant 0 : i32
    %c0_i32_1 = arith.constant 0 : i32
    return %c0_i32, %c0_i32_0 : i32, i32
  }
  func.func @transform_3(%arg0: i32) -> (i32, i32) {
    %c0_i32 = arith.constant 0 : i32
    %c0_i32_0 = arith.constant 0 : i32
    %c0_i32_1 = arith.constant 0 : i32
    return %c0_i32, %c0_i32_0 : i32, i32
  }
  func.func @transform_4(%arg0: i32) -> (i32, i32) {
    %c0_i32 = arith.constant 0 : i32
    %c0_i32_0 = arith.constant 0 : i32
    %c0_i32_1 = arith.constant 0 : i32
    return %c0_i32, %c0_i32_0 : i32, i32
  }
  func.func @transform_5(%arg0: i32) -> (i32, i32) {
    %c0_i32 = arith.constant 0 : i32
    %c0_i32_0 = arith.constant 0 : i32
    return %arg0, %c0_i32 : i32, i32
  }
}

</mosaic_0001>

<bundles_post_ra>
// kernel: ml_model_forward.1
= control target key start
LH: loop header
LB: loop body
LE: loop exit
PB: predicated region body
PF: predicated region fallthrough
CT: control target
= control target key end

     0   :  { %vm27_vm0 = vcmask 130048   ;;  %vm95_vm1 = vcmask 31744   ;;  %s202_s1 = inlined_call_operand.vmem [shape: f32[16,128], index: 1, kind: input, shape index: {}]   ;;  %s203_s0 = inlined_call_operand.vmem [shape: f32[8,16], index: 0, kind: input, shape index: {}]   ;;  %s204_s3 = inlined_call_operand.vmem [shape: f32[128,4], index: 3, kind: input, shape index: {}]   ;;  %s205_s2 = inlined_call_operand.vmem [shape: f32[1,128], index: 2, kind: input, shape index: {}]   ;;  %s206_s4 = inlined_call_operand.vmem [shape: f32[1,4], index: 4, kind: input, shape index: {}]   ;;  %s207_s5 = inlined_call_operand.vmem [shape: f32[8,4], index: 5, kind: output, shape index: {}]  }
   0x1   :  { %v22_v0 = vld [vmem:[%s202_s1 + $0x8] sm:$0xff]  ;;  %v21_v1 = vld [vmem:[%s202_s1] sm:$0xff]  ;;  %v70_v3 = vld [vmem:[%s204_s3 + $0x78] sm:$0xff] }
   0x2   :  { %45 = vmatpush.msra.mxu0 %v22_v0  ;;  %v20_v2 = vld [vmem:[%s203_s0] sm:$0xff]  ;;  %v69_v4 = vld [vmem:[%s204_s3 + $0x70] sm:$0xff]  ;;  %75 = vmatpush.msra.mxu1 %v70_v3  ;;  %v68_v5 = vld [vmem:[%s204_s3 + $0x68] sm:$0xff] }
   0x3   :  { %v67_v6 = vld [vmem:[%s204_s3 + $0x60] sm:$0xff]  ;;  %v66_v7 = vld [vmem:[%s204_s3 + $0x58] sm:$0xff]  ;;  %v65_v8 = vld [vmem:[%s204_s3 + $0x50] sm:$0xff] }
   0x4   :  { %46 = vmatpush.msra.mxu0 %v21_v1  ;;  %76 = vmatpush.msra.mxu1 %v69_v4  ;;  %v64_v9 = vld [vmem:[%s204_s3 + $0x48] sm:$0xff]  ;;  %v63_v10 = vld [vmem:[%s204_s3 + $0x40] sm:$0xff]  ;;  %v62_v11 = vld [vmem:[%s204_s3 + $0x38] sm:$0xff] }
   0x5   :  { %101 = vmatmul.msk.f32.vlgmr.msra.gmra.mxu0 %vm27_vm0, %v20_v2  ;;  %v61_v12 = vld [vmem:[%s204_s3 + $0x30] sm:$0xff]  ;;  %v60_v13 = vld [vmem:[%s204_s3 + $0x28] sm:$0xff]  ;;  %v59_v14 = vld [vmem:[%s204_s3 + $0x20] sm:$0xff] }
   0x6   :  { %77 = vmatpush.msra.mxu1 %v68_v5  ;;  %v58_v15 = vld [vmem:[%s204_s3 + $0x18] sm:$0xff]  ;;  %v57_v16 = vld [vmem:[%s204_s3 + $0x10] sm:$0xff]  ;;  %v56_v17 = vld [vmem:[%s204_s3 + $0x8] sm:$0xff] }
   0x7   :  { %v55_v18 = vld [vmem:[%s204_s3] sm:$0xff] }
   0x8   :  { %78 = vmatpush.msra.mxu1 %v67_v6  ;;  %v102_v19 = vld [vmem:[%s205_s2] ss:$0 sm:$0xff] }
   0x9   :  { %v103_v26 = vld [vmem:[%s206_s4] ss:$0 sm:$0xff] }
   0xa   :  { %79 = vmatpush.msra.mxu1 %v66_v7 }
   0xc   :  { %80 = vmatpush.msra.mxu1 %v65_v8 }
   0xe   :  { %81 = vmatpush.msra.mxu1 %v64_v9 }
  0x10   :  { %82 = vmatpush.msra.mxu1 %v63_v10 }
  0x12   :  { %83 = vmatpush.msra.mxu1 %v62_v11 }
  0x14   :  { %84 = vmatpush.msra.mxu1 %v61_v12 }
  0x16   :  { %85 = vmatpush.msra.mxu1 %v60_v13 }
  0x18   :  { %86 = vmatpush.msra.mxu1 %v59_v14 }
  0x1a   :  { %87 = vmatpush.msra.mxu1 %v58_v15 }
  0x1c   :  { %88 = vmatpush.msra.mxu1 %v57_v16 }
  0x1e   :  { %89 = vmatpush.msra.mxu1 %v56_v17 }
  0x20   :  { %90 = vmatpush.msra.mxu1 %v55_v18 }
  0x82   :  { %v48_v20 = vpop.f32.mrf.mxu0 }
  0x83   :  { %v49_v21 = vadd.f32 %v102_v19, %v48_v20 }
  0x85   :  { %v51_v22 = vmul.f32 0.5, %v49_v21 }
  0x87   :  { %104 = vtanh.f32 %v51_v22 }
  0x8d   :  { %v105_v23 = vpop.eup %104 }
  0x8e   :  { %v53_v24 = vmul.f32 0.5, %v105_v23 }
  0x90   :  { %v54_v25 = vadd.f32 0.5, %v53_v24 }
  0x92   :  { %91 = vmatmul.f32.vlgmr.msra.gmra.mxu1 %v54_v25 }
 0x10f   :  { %v92_v27 = vpop.f32.mrf.mxu1 }
 0x110   :  { %v93_v28 = vadd.f32 %v103_v26, %v92_v27 }
 0x112   :  { %96 = vst.msk [vmem:[%s207_s5] sm:$0xff] %vm95_vm1, %v93_v28 }

</bundles_post_ra>
